<compile_context>
chip_gen: v7x
topology: tpu7x:2x2x1
jax: 0.10.0
libtpu: 0.0.40
codegen_flags: <defaults>
</compile_context>

<pallas_src>
import functools

import jax
import jax.numpy as jnp
from jax.experimental import pallas as pl
from jax.experimental.pallas import tpu as pltpu

_INV_SQRT2 = 0.7071067811865476


def _gelu_exact(x):
    # nn.GELU() default = exact erf formulation
    return 0.5 * x * (1.0 + jax.lax.erf(x * _INV_SQRT2))


# --------------------------------------------------------------------------
# Pass 1: effective 5x5 conv (single MXU matmul) + per-channel sum / sumsq
# --------------------------------------------------------------------------
def _conv_pass_kernel(Wp, F_out,
                      xpad_ref,     # (1, C, F_pad)  padded, flattened input
                      weff_ref,     # (C, 25*C)      effective conv weights
                      beff_ref,     # (C, 1)         effective conv bias
                      mask_ref,     # (1, F_out)     1.0 on valid columns
                      fused_ref,    # (1, C, F_out)  output: fused conv
                      sum_ref,      # (1, C, 1)      output: per-channel sum
                      sumsq_ref):   # (1, C, 1)      output: per-channel sumsq
    # im2col: every 5x5 tap is a contiguous lane-offset slice of the
    # flattened (padded-width) spatial axis — no strided window copies.
    cols = []
    for dy in range(5):
        for dx in range(5):
            off = dy * Wp + dx
            cols.append(xpad_ref[0, :, off:off + F_out])      # (C, F_out)
    im2col = jnp.concatenate(cols, axis=0)                    # (25*C, F_out)

    # One effective-5x5 conv as a single matmul with K = 25*C.
    # TODO(synk): on v6e/v7x cast im2col/weff to bf16 (f32 accumulate) for
    # ~2x MXU throughput; kept f32 here for strict numerics.
    fused = jnp.dot(weff_ref[...], im2col,
                    preferred_element_type=jnp.float32) + beff_ref[...]
    fused_ref[0] = fused

    # BN statistics folded into the conv epilogue.  The flattened layout keeps
    # the padding columns (x in [W, Wp)) around as garbage, so mask them out.
    masked = fused * mask_ref[...]
    sum_ref[0] = jnp.sum(masked, axis=1, keepdims=True)          # (C, 1)
    sumsq_ref[0] = jnp.sum(masked * fused, axis=1, keepdims=True)  # (C, 1)


# --------------------------------------------------------------------------
# Pass 2: BN affine (global batch stats) + exact GELU + residual
# --------------------------------------------------------------------------
def _bn_act_kernel(Wp, F_out,
                   fused_ref,    # (1, C, F_out)
                   xpad_ref,     # (1, C, F_pad)   residual source
                   scale_ref,    # (C, 1)  gamma / sqrt(var+eps)
                   shift_ref,    # (C, 1)  beta  - mean * scale
                   out_ref):     # (1, C, F_out)
    bn = fused_ref[0] * scale_ref[...] + shift_ref[...]
    act = _gelu_exact(bn)
    off = 2 * Wp + 2                         # center of the 5x5 window
    out_ref[0] = act + xpad_ref[0, :, off:off + F_out]


# --------------------------------------------------------------------------
# Wrapper
# --------------------------------------------------------------------------
def adaptive_scale_processor(x_nchw, pw):
    """x_nchw: (N, C, H, W) float32.  pw: PyTorch-layout parameters."""
    N, C, H, W = x_nchw.shape
    Wp = W + 4                     # padded width (pad 2 on each side)
    F_out = H * Wp                 # flattened output rows (pad cols kept)
    F_pad = (H + 5) * Wp           # pad 2 top / 3 bottom keeps tap slices in-bounds

    # ---- fold the 3 branch convs + 1x1 fusion into one effective 5x5 conv ----
    wf2d = pw['wf'][:, :, 0, 0]                                  # (C, 3C)
    wf0, wf1, wf2 = wf2d[:, :C], wf2d[:, C:2 * C], wf2d[:, 2 * C:]
    w1m = pw['w1'][:, :, 0, 0]                                   # (C, C)

    weff = jnp.einsum('om,mikl->oikl', wf2, pw['w5'])            # (C, C, 5, 5)
    weff = weff.at[:, :, 1:4, 1:4].add(
        jnp.einsum('om,mikl->oikl', wf1, pw['w3']))
    weff = weff.at[:, :, 2, 2].add(wf0 @ w1m)
    beff = wf0 @ pw['b1'] + wf1 @ pw['b3'] + wf2 @ pw['b5'] + pw['bf']

    # kernel layout: weff_k[o, (dy*5+dx)*C + i] = weff[o, i, dy, dx]
    weff_k = jnp.transpose(weff, (0, 2, 3, 1)).reshape(C, 25 * C).astype(jnp.float32)
    beff_k = beff.reshape(C, 1).astype(jnp.float32)

    # ---- channel-major flattened padded input ----
    x_pad = jnp.pad(x_nchw.astype(jnp.float32), ((0, 0), (0, 0), (2, 3), (2, 2)))
    x_flat = x_pad.reshape(N, C, F_pad)

    # validity mask over the flattened output columns
    mask = (jnp.arange(F_out, dtype=jnp.int32) % Wp < W)
    mask = mask.astype(jnp.float32).reshape(1, F_out)

    cparams = pltpu.CompilerParams(dimension_semantics=("parallel",),
                                   vmem_limit_bytes=32 * 1024 * 1024)

    # ---- pass 1: effective 5x5 conv + per-channel sum / sumsq ----
    conv_kernel = functools.partial(_conv_pass_kernel, Wp, F_out)
    fused, ssum, ssq = pl.pallas_call(
        conv_kernel,
        out_shape=(jax.ShapeDtypeStruct((N, C, F_out), jnp.float32),
                   jax.ShapeDtypeStruct((N, C, 1), jnp.float32),
                   jax.ShapeDtypeStruct((N, C, 1), jnp.float32)),
        grid_spec=pltpu.PrefetchScalarGridSpec(
            num_scalar_prefetch=0,
            grid=(N,),
            in_specs=[
                pl.BlockSpec((1, C, F_pad), lambda n: (n, 0, 0)),
                pl.BlockSpec((C, 25 * C), lambda n: (0, 0)),
                pl.BlockSpec((C, 1), lambda n: (0, 0)),
                pl.BlockSpec((1, F_out), lambda n: (0, 0)),
            ],
            out_specs=[
                pl.BlockSpec((1, C, F_out), lambda n: (n, 0, 0)),
                pl.BlockSpec((1, C, 1), lambda n: (n, 0, 0)),
                pl.BlockSpec((1, C, 1), lambda n: (n, 0, 0)),
            ]),
        compiler_params=cparams,
    )(x_flat, weff_k, beff_k, mask)

    # ---- global training-mode BN statistics from per-batch partials ----
    cnt = float(N * H * W)
    total = jnp.sum(ssum[:, :, 0], axis=0)                       # (C,)
    total_sq = jnp.sum(ssq[:, :, 0], axis=0)                     # (C,)
    mean = total / cnt
    var = jnp.maximum(total_sq / cnt - mean * mean, 0.0)         # biased variance
    inv_std = jax.lax.rsqrt(var + 1e-5)
    scale_k = (pw['gamma'] * inv_std).reshape(C, 1).astype(jnp.float32)
    shift_k = (pw['beta'] - mean * pw['gamma'] * inv_std).reshape(C, 1).astype(jnp.float32)

    # ---- pass 2: BN affine + exact GELU + residual (lane-dense) ----
    bn_kernel = functools.partial(_bn_act_kernel, Wp, F_out)
    out_flat = pl.pallas_call(
        bn_kernel,
        out_shape=jax.ShapeDtypeStruct((N, C, F_out), jnp.float32),
        grid_spec=pltpu.PrefetchScalarGridSpec(
            num_scalar_prefetch=0,
            grid=(N,),
            in_specs=[
                pl.BlockSpec((1, C, F_out), lambda n: (n, 0, 0)),
                pl.BlockSpec((1, C, F_pad), lambda n: (n, 0, 0)),
                pl.BlockSpec((C, 1), lambda n: (0, 0)),
                pl.BlockSpec((C, 1), lambda n: (0, 0)),
            ],
            out_specs=pl.BlockSpec((1, C, F_out), lambda n: (n, 0, 0))),
        compiler_params=cparams,
    )(fused, x_flat, scale_k, shift_k)

    # strip the padding columns that rode along in the flattened layout
    return out_flat.reshape(N, C, H, Wp)[:, :, :, :W]


# --------------------------------------------------------------------------
# Pure-JAX reference matching the PyTorch forward (training-mode BN)
# --------------------------------------------------------------------------
def reference_nchw(x, pw):
    def conv(inp, w, b, pad):
        y = jax.lax.conv_general_dilated(
            inp, w, (1, 1), [(pad, pad), (pad, pad)],
            dimension_numbers=('NCHW', 'OIHW', 'NCHW'))
        return y + b[None, :, None, None]

    local = conv(x, pw['w1'], pw['b1'], 0)
    regional = conv(x, pw['w3'], pw['b3'], 1)
    glob = conv(x, pw['w5'], pw['b5'], 2)
    ms = jnp.concatenate([local, regional, glob], axis=1)
    fused = conv(ms, pw['wf'], pw['bf'], 0)
    mean = jnp.mean(fused, axis=(0, 2, 3), keepdims=True)
    var = jnp.mean((fused - mean) ** 2, axis=(0, 2, 3), keepdims=True)
    bn = ((fused - mean) * jax.lax.rsqrt(var + 1e-5)
          * pw['gamma'][None, :, None, None] + pw['beta'][None, :, None, None])
    gelu = 0.5 * bn * (1.0 + jax.lax.erf(bn * _INV_SQRT2))
    return gelu + x


if __name__ == "__main__":
    N, C, H, W = 2, 4, 16, 16

    key = jax.random.PRNGKey(0)
    ks = jax.random.split(key, 11)
    pw = {
        'w1': 0.20 * jax.random.normal(ks[0], (C, C, 1, 1), jnp.float32),
        'b1': 0.10 * jax.random.normal(ks[1], (C,), jnp.float32),
        'w3': 0.10 * jax.random.normal(ks[2], (C, C, 3, 3), jnp.float32),
        'b3': 0.10 * jax.random.normal(ks[3], (C,), jnp.float32),
        'w5': 0.05 * jax.random.normal(ks[4], (C, C, 5, 5), jnp.float32),
        'b5': 0.10 * jax.random.normal(ks[5], (C,), jnp.float32),
        'wf': 0.10 * jax.random.normal(ks[6], (C, 3 * C, 1, 1), jnp.float32),
        'bf': 0.10 * jax.random.normal(ks[7], (C,), jnp.float32),
        'gamma': 1.0 + 0.10 * jax.random.normal(ks[8], (C,), jnp.float32),
        'beta': 0.10 * jax.random.normal(ks[9], (C,), jnp.float32),
    }
    x = jax.random.normal(ks[10], (N, C, H, W), jnp.float32)

    out = adaptive_scale_processor(x, pw)
    out = jax.block_until_ready(out)

    ref = jax.block_until_ready(reference_nchw(x, pw))
    assert out.shape == (N, C, H, W)
    assert jnp.allclose(out, ref, rtol=1e-3, atol=1e-3), \
        f"max abs diff {float(jnp.max(jnp.abs(out - ref)))}"

    print("KERNEL_OK")
</pallas_src>

<mosaic_0001>
module attributes {stable_mosaic.version = 11 : i64} {
  func.func @_conv_pass_kernel(%arg0: i32, %arg1: memref<1x4x420xf32, #tpu.memory_space<vmem>>, %arg2: memref<4x100xf32, #tpu.memory_space<vmem>>, %arg3: memref<4x1xf32, #tpu.memory_space<vmem>>, %arg4: memref<1x320xf32, #tpu.memory_space<vmem>>, %arg5: memref<1x4x320xf32, #tpu.memory_space<vmem>>, %arg6: memref<1x4x1xf32, #tpu.memory_space<vmem>>, %arg7: memref<1x4x1xf32, #tpu.memory_space<vmem>>) attributes {dimension_semantics = [#tpu.dimension_semantics<parallel>], iteration_bounds = array<i64: 2>, scalar_prefetch = 0 : i64, scratch_operands = 0 : i64, tpu.core_type = #tpu.core_type<tc>, window_params = [{transform_indices = @transform_0, window_bounds = array<i64: 1, 4, 420>}, {pipeline_mode = #tpu.pipeline_mode<synchronous>, transform_indices = @transform_1, window_bounds = array<i64: 4, 100>}, {pipeline_mode = #tpu.pipeline_mode<synchronous>, transform_indices = @transform_2, window_bounds = array<i64: 4, 1>}, {pipeline_mode = #tpu.pipeline_mode<synchronous>, transform_indices = @transform_3, window_bounds = array<i64: 1, 320>}, {transform_indices = @transform_4, window_bounds = array<i64: 1, 4, 320>}, {transform_indices = @transform_5, window_bounds = array<i64: 1, 4, 1>}, {transform_indices = @transform_6, window_bounds = array<i64: 1, 4, 1>}]} {
    %c0 = arith.constant 0 : index
    %c0_0 = arith.constant 0 : index
    %c0_1 = arith.constant 0 : index
    %0 = vector.load %arg1[%c0, %c0_0, %c0_1] : memref<1x4x420xf32, #tpu.memory_space<vmem>>, vector<1x4x320xf32>
    %1 = vector.shape_cast %0 : vector<1x4x320xf32> to vector<4x320xf32>
    %c0_2 = arith.constant 0 : index
    %c0_3 = arith.constant 0 : index
    %c1 = arith.constant 1 : index
    %2 = vector.load %arg1[%c0_2, %c0_3, %c1] : memref<1x4x420xf32, #tpu.memory_space<vmem>>, vector<1x4x320xf32>
    %3 = vector.shape_cast %2 : vector<1x4x320xf32> to vector<4x320xf32>
    %c0_4 = arith.constant 0 : index
    %c0_5 = arith.constant 0 : index
    %c2 = arith.constant 2 : index
    %4 = vector.load %arg1[%c0_4, %c0_5, %c2] : memref<1x4x420xf32, #tpu.memory_space<vmem>>, vector<1x4x320xf32>
    %5 = vector.shape_cast %4 : vector<1x4x320xf32> to vector<4x320xf32>
    %c0_6 = arith.constant 0 : index
    %c0_7 = arith.constant 0 : index
    %c3 = arith.constant 3 : index
    %6 = vector.load %arg1[%c0_6, %c0_7, %c3] : memref<1x4x420xf32, #tpu.memory_space<vmem>>, vector<1x4x320xf32>
    %7 = vector.shape_cast %6 : vector<1x4x320xf32> to vector<4x320xf32>
    %c0_8 = arith.constant 0 : index
    %c0_9 = arith.constant 0 : index
    %c4 = arith.constant 4 : index
    %8 = vector.load %arg1[%c0_8, %c0_9, %c4] : memref<1x4x420xf32, #tpu.memory_space<vmem>>, vector<1x4x320xf32>
    %9 = vector.shape_cast %8 : vector<1x4x320xf32> to vector<4x320xf32>
    %c0_10 = arith.constant 0 : index
    %c0_11 = arith.constant 0 : index
    %c20 = arith.constant 20 : index
    %10 = vector.load %arg1[%c0_10, %c0_11, %c20] : memref<1x4x420xf32, #tpu.memory_space<vmem>>, vector<1x4x320xf32>
    %11 = vector.shape_cast %10 : vector<1x4x320xf32> to vector<4x320xf32>
    %c0_12 = arith.constant 0 : index
    %c0_13 = arith.constant 0 : index
    %c21 = arith.constant 21 : index
    %12 = vector.load %arg1[%c0_12, %c0_13, %c21] : memref<1x4x420xf32, #tpu.memory_space<vmem>>, vector<1x4x320xf32>
    %13 = vector.shape_cast %12 : vector<1x4x320xf32> to vector<4x320xf32>
    %c0_14 = arith.constant 0 : index
    %c0_15 = arith.constant 0 : index
    %c22 = arith.constant 22 : index
    %14 = vector.load %arg1[%c0_14, %c0_15, %c22] : memref<1x4x420xf32, #tpu.memory_space<vmem>>, vector<1x4x320xf32>
    %15 = vector.shape_cast %14 : vector<1x4x320xf32> to vector<4x320xf32>
    %c0_16 = arith.constant 0 : index
    %c0_17 = arith.constant 0 : index
    %c23 = arith.constant 23 : index
    %16 = vector.load %arg1[%c0_16, %c0_17, %c23] : memref<1x4x420xf32, #tpu.memory_space<vmem>>, vector<1x4x320xf32>
    %17 = vector.shape_cast %16 : vector<1x4x320xf32> to vector<4x320xf32>
    %c0_18 = arith.constant 0 : index
    %c0_19 = arith.constant 0 : index
    %c24 = arith.constant 24 : index
    %18 = vector.load %arg1[%c0_18, %c0_19, %c24] : memref<1x4x420xf32, #tpu.memory_space<vmem>>, vector<1x4x320xf32>
    %19 = vector.shape_cast %18 : vector<1x4x320xf32> to vector<4x320xf32>
    %c0_20 = arith.constant 0 : index
    %c0_21 = arith.constant 0 : index
    %c40 = arith.constant 40 : index
    %20 = vector.load %arg1[%c0_20, %c0_21, %c40] : memref<1x4x420xf32, #tpu.memory_space<vmem>>, vector<1x4x320xf32>
    %21 = vector.shape_cast %20 : vector<1x4x320xf32> to vector<4x320xf32>
    %c0_22 = arith.constant 0 : index
    %c0_23 = arith.constant 0 : index
    %c41 = arith.constant 41 : index
    %22 = vector.load %arg1[%c0_22, %c0_23, %c41] : memref<1x4x420xf32, #tpu.memory_space<vmem>>, vector<1x4x320xf32>
    %23 = vector.shape_cast %22 : vector<1x4x320xf32> to vector<4x320xf32>
    %c0_24 = arith.constant 0 : index
    %c0_25 = arith.constant 0 : index
    %c42 = arith.constant 42 : index
    %24 = vector.load %arg1[%c0_24, %c0_25, %c42] : memref<1x4x420xf32, #tpu.memory_space<vmem>>, vector<1x4x320xf32>
    %25 = vector.shape_cast %24 : vector<1x4x320xf32> to vector<4x320xf32>
    %c0_26 = arith.constant 0 : index
    %c0_27 = arith.constant 0 : index
    %c43 = arith.constant 43 : index
    %26 = vector.load %arg1[%c0_26, %c0_27, %c43] : memref<1x4x420xf32, #tpu.memory_space<vmem>>, vector<1x4x320xf32>
    %27 = vector.shape_cast %26 : vector<1x4x320xf32> to vector<4x320xf32>
    %c0_28 = arith.constant 0 : index
    %c0_29 = arith.constant 0 : index
    %c44 = arith.constant 44 : index
    %28 = vector.load %arg1[%c0_28, %c0_29, %c44] : memref<1x4x420xf32, #tpu.memory_space<vmem>>, vector<1x4x320xf32>
    %29 = vector.shape_cast %28 : vector<1x4x320xf32> to vector<4x320xf32>
    %c0_30 = arith.constant 0 : index
    %c0_31 = arith.constant 0 : index
    %c60 = arith.constant 60 : index
    %30 = vector.load %arg1[%c0_30, %c0_31, %c60] : memref<1x4x420xf32, #tpu.memory_space<vmem>>, vector<1x4x320xf32>
    %31 = vector.shape_cast %30 : vector<1x4x320xf32> to vector<4x320xf32>
    %c0_32 = arith.constant 0 : index
    %c0_33 = arith.constant 0 : index
    %c61 = arith.constant 61 : index
    %32 = vector.load %arg1[%c0_32, %c0_33, %c61] : memref<1x4x420xf32, #tpu.memory_space<vmem>>, vector<1x4x320xf32>
    %33 = vector.shape_cast %32 : vector<1x4x320xf32> to vector<4x320xf32>
    %c0_34 = arith.constant 0 : index
    %c0_35 = arith.constant 0 : index
    %c62 = arith.constant 62 : index
    %34 = vector.load %arg1[%c0_34, %c0_35, %c62] : memref<1x4x420xf32, #tpu.memory_space<vmem>>, vector<1x4x320xf32>
    %35 = vector.shape_cast %34 : vector<1x4x320xf32> to vector<4x320xf32>
    %c0_36 = arith.constant 0 : index
    %c0_37 = arith.constant 0 : index
    %c63 = arith.constant 63 : index
    %36 = vector.load %arg1[%c0_36, %c0_37, %c63] : memref<1x4x420xf32, #tpu.memory_space<vmem>>, vector<1x4x320xf32>
    %37 = vector.shape_cast %36 : vector<1x4x320xf32> to vector<4x320xf32>
    %c0_38 = arith.constant 0 : index
    %c0_39 = arith.constant 0 : index
    %c64 = arith.constant 64 : index
    %38 = vector.load %arg1[%c0_38, %c0_39, %c64] : memref<1x4x420xf32, #tpu.memory_space<vmem>>, vector<1x4x320xf32>
    %39 = vector.shape_cast %38 : vector<1x4x320xf32> to vector<4x320xf32>
    %c0_40 = arith.constant 0 : index
    %c0_41 = arith.constant 0 : index
    %c80 = arith.constant 80 : index
    %40 = vector.load %arg1[%c0_40, %c0_41, %c80] : memref<1x4x420xf32, #tpu.memory_space<vmem>>, vector<1x4x320xf32>
    %41 = vector.shape_cast %40 : vector<1x4x320xf32> to vector<4x320xf32>
    %c0_42 = arith.constant 0 : index
    %c0_43 = arith.constant 0 : index
    %c81 = arith.constant 81 : index
    %42 = vector.load %arg1[%c0_42, %c0_43, %c81] : memref<1x4x420xf32, #tpu.memory_space<vmem>>, vector<1x4x320xf32>
    %43 = vector.shape_cast %42 : vector<1x4x320xf32> to vector<4x320xf32>
    %c0_44 = arith.constant 0 : index
    %c0_45 = arith.constant 0 : index
    %c82 = arith.constant 82 : index
    %44 = vector.load %arg1[%c0_44, %c0_45, %c82] : memref<1x4x420xf32, #tpu.memory_space<vmem>>, vector<1x4x320xf32>
    %45 = vector.shape_cast %44 : vector<1x4x320xf32> to vector<4x320xf32>
    %c0_46 = arith.constant 0 : index
    %c0_47 = arith.constant 0 : index
    %c83 = arith.constant 83 : index
    %46 = vector.load %arg1[%c0_46, %c0_47, %c83] : memref<1x4x420xf32, #tpu.memory_space<vmem>>, vector<1x4x320xf32>
    %47 = vector.shape_cast %46 : vector<1x4x320xf32> to vector<4x320xf32>
    %c0_48 = arith.constant 0 : index
    %c0_49 = arith.constant 0 : index
    %c84 = arith.constant 84 : index
    %48 = vector.load %arg1[%c0_48, %c0_49, %c84] : memref<1x4x420xf32, #tpu.memory_space<vmem>>, vector<1x4x320xf32>
    %49 = vector.shape_cast %48 : vector<1x4x320xf32> to vector<4x320xf32>
    %50 = tpu.concatenate %1, %3, %5, %7, %9, %11, %13, %15, %17, %19, %21, %23, %25, %27, %29, %31 in 0 : vector<4x320xf32>, vector<4x320xf32>, vector<4x320xf32>, vector<4x320xf32>, vector<4x320xf32>, vector<4x320xf32>, vector<4x320xf32>, vector<4x320xf32>, vector<4x320xf32>, vector<4x320xf32>, vector<4x320xf32>, vector<4x320xf32>, vector<4x320xf32>, vector<4x320xf32>, vector<4x320xf32>, vector<4x320xf32> -> vector<64x320xf32>
    %51 = tpu.concatenate %33, %35, %37, %39, %41, %43, %45, %47, %49 in 0 : vector<4x320xf32>, vector<4x320xf32>, vector<4x320xf32>, vector<4x320xf32>, vector<4x320xf32>, vector<4x320xf32>, vector<4x320xf32>, vector<4x320xf32>, vector<4x320xf32> -> vector<36x320xf32>
    %52 = tpu.concatenate %50, %51 in 0 : vector<64x320xf32>, vector<36x320xf32> -> vector<100x320xf32>
    %c0_50 = arith.constant 0 : index
    %c0_51 = arith.constant 0 : index
    %53 = vector.load %arg2[%c0_50, %c0_51] : memref<4x100xf32, #tpu.memory_space<vmem>>, vector<4x100xf32>
    %cst = arith.constant dense<0.000000e+00> : vector<4x320xf32>
    %54 = tpu.matmul %53, %52, %cst {dimension_numbers = #tpu.dot_dimension_numbers<[1], [0], [0], [1], [0, 0, 1, 1], [], []>} : vector<4x100xf32>, vector<100x320xf32>, vector<4x320xf32> -> vector<4x320xf32>
    %c0_52 = arith.constant 0 : index
    %c0_53 = arith.constant 0 : index
    %55 = vector.load %arg3[%c0_52, %c0_53] : memref<4x1xf32, #tpu.memory_space<vmem>>, vector<4x1xf32>
    %56 = vector.broadcast %55 : vector<4x1xf32> to vector<4x320xf32>
    %57 = arith.addf %54, %56 : vector<4x320xf32>
    %c0_54 = arith.constant 0 : index
    %c0_55 = arith.constant 0 : index
    %c0_56 = arith.constant 0 : index
    %58 = vector.load %arg5[%c0_54, %c0_55, %c0_56] : memref<1x4x320xf32, #tpu.memory_space<vmem>>, vector<1x4x320xf32>
    %59 = vector.shape_cast %58 : vector<1x4x320xf32> to vector<4x320xf32>
    %60 = vector.shape_cast %57 : vector<4x320xf32> to vector<1x4x320xf32>
    tpu.vector_store %arg5[%c0_54, %c0_55, %c0_56], %60 {strides = array<i32>} : memref<1x4x320xf32, #tpu.memory_space<vmem>>, vector<1x4x320xf32>,
    %c0_57 = arith.constant 0 : index
    %c0_58 = arith.constant 0 : index
    %61 = vector.load %arg4[%c0_57, %c0_58] : memref<1x320xf32, #tpu.memory_space<vmem>>, vector<1x320xf32>
    %62 = vector.broadcast %61 : vector<1x320xf32> to vector<4x320xf32>
    %63 = arith.mulf %57, %62 : vector<4x320xf32>
    %cst_59 = arith.constant dense<0.000000e+00> : vector<4xf32>
    %64 = vector.multi_reduction <add>, %63, %cst_59 [1] : vector<4x320xf32> to vector<4xf32>
    %65 = vector.shape_cast %64 : vector<4xf32> to vector<4x1xf32>
    %c0_60 = arith.constant 0 : index
    %c0_61 = arith.constant 0 : index
    %c0_62 = arith.constant 0 : index
    %66 = vector.load %arg6[%c0_60, %c0_61, %c0_62] : memref<1x4x1xf32, #tpu.memory_space<vmem>>, vector<1x4x1xf32>
    %67 = vector.shape_cast %66 : vector<1x4x1xf32> to vector<4x1xf32>
    %68 = vector.shape_cast %65 : vector<4x1xf32> to vector<1x4x1xf32>
    tpu.vector_store %arg6[%c0_60, %c0_61, %c0_62], %68 {strides = array<i32>} : memref<1x4x1xf32, #tpu.memory_space<vmem>>, vector<1x4x1xf32>,
    %69 = arith.mulf %63, %57 : vector<4x320xf32>
    %cst_63 = arith.constant dense<0.000000e+00> : vector<4xf32>
    %70 = vector.multi_reduction <add>, %69, %cst_63 [1] : vector<4x320xf32> to vector<4xf32>
    %71 = vector.shape_cast %70 : vector<4xf32> to vector<4x1xf32>
    %c0_64 = arith.constant 0 : index
    %c0_65 = arith.constant 0 : index
    %c0_66 = arith.constant 0 : index
    %72 = vector.load %arg7[%c0_64, %c0_65, %c0_66] : memref<1x4x1xf32, #tpu.memory_space<vmem>>, vector<1x4x1xf32>
    %73 = vector.shape_cast %72 : vector<1x4x1xf32> to vector<4x1xf32>
    %74 = vector.shape_cast %71 : vector<4x1xf32> to vector<1x4x1xf32>
    tpu.vector_store %arg7[%c0_64, %c0_65, %c0_66], %74 {strides = array<i32>} : memref<1x4x1xf32, #tpu.memory_space<vmem>>, vector<1x4x1xf32>,
    return
  }
  func.func @transform_0(%arg0: i32) -> (i32, i32, i32) {
    %c0_i32 = arith.constant 0 : i32
    %c0_i32_0 = arith.constant 0 : i32
    %c0_i32_1 = arith.constant 0 : i32
    return %arg0, %c0_i32, %c0_i32_0 : i32, i32, i32
  }
  func.func @transform_1(%arg0: i32) -> (i32, i32) {
    %c0_i32 = arith.constant 0 : i32
    %c0_i32_0 = arith.constant 0 : i32
    %c0_i32_1 = arith.constant 0 : i32
    return %c0_i32, %c0_i32_0 : i32, i32
  }
  func.func @transform_2(%arg0: i32) -> (i32, i32) {
    %c0_i32 = arith.constant 0 : i32
    %c0_i32_0 = arith.constant 0 : i32
    %c0_i32_1 = arith.constant 0 : i32
    return %c0_i32, %c0_i32_0 : i32, i32
  }
  func.func @transform_3(%arg0: i32) -> (i32, i32) {
    %c0_i32 = arith.constant 0 : i32
    %c0_i32_0 = arith.constant 0 : i32
    %c0_i32_1 = arith.constant 0 : i32
    return %c0_i32, %c0_i32_0 : i32, i32
  }
  func.func @transform_4(%arg0: i32) -> (i32, i32, i32) {
    %c0_i32 = arith.constant 0 : i32
    %c0_i32_0 = arith.constant 0 : i32
    %c0_i32_1 = arith.constant 0 : i32
    return %arg0, %c0_i32, %c0_i32_0 : i32, i32, i32
  }
  func.func @transform_5(%arg0: i32) -> (i32, i32, i32) {
    %c0_i32 = arith.constant 0 : i32
    %c0_i32_0 = arith.constant 0 : i32
    %c0_i32_1 = arith.constant 0 : i32
    return %arg0, %c0_i32, %c0_i32_0 : i32, i32, i32
  }
  func.func @transform_6(%arg0: i32) -> (i32, i32, i32) {
    %c0_i32 = arith.constant 0 : i32
    %c0_i32_0 = arith.constant 0 : i32
    %c0_i32_1 = arith.constant 0 : i32
    return %arg0, %c0_i32, %c0_i32_0 : i32, i32, i32
  }
}

</mosaic_0001>

<bundles_post_ra>
// kernel: tpu_custom_call.1
= control target key start
LH: loop header
LB: loop body
LE: loop exit
PB: predicated region body
PF: predicated region fallthrough
CT: control target
= control target key end

     0   :  { %12 = vsyncpa [#allocation3], 0  ;;  %s1763_s0 = inlined_call_operand.hbm [shape: f32[2,4,420], index: 0, kind: input, shape index: {}]   ;;  %s1764_s1 = inlined_call_operand.vmem [shape: f32[4,100], index: 1, kind: input, shape index: {}]   ;;  %s1765_s2 = inlined_call_operand.vmem [shape: f32[4,1], index: 2, kind: input, shape index: {}]   ;;  %s1766_s3 = inlined_call_operand.vmem [shape: f32[1,320], index: 3, kind: input, shape index: {}]   ;;  %s1767_s4 = inlined_call_operand.hbm [shape: f32[2,4,320], index: 4, kind: output, shape index: {0}]   ;;  %s1768_s5 = inlined_call_operand.vmem [shape: f32[2,4,1], index: 5, kind: output, shape index: {1}]   ;;  %s1769_s6 = inlined_call_operand.vmem [shape: f32[2,4,1], index: 6, kind: output, shape index: {2}]  }
   0x1   :  { %14 = vsyncpa [#allocation3 + $0x1], 0 }
   0x2   :  { %15 = vsyncpa [#allocation4], 0 }
   0x3   :  { %17 = vsyncpa [#allocation4 + $0x1], 0  ;;  %s1434_s21 = smov 0   ;;  %s1436_s22 = smov 0  }
   0x4   :  { %s1438_s23 = smov 0   ;;  %s1440_s24 = smov 0  }
   0x5 LB: > { %s1455_s25 = sadd.s32 4294967295, %s1374_s24   ;;  %s973_s26 = sadd.s32 4294967294, %s1374_s24   ;;  %s1374_s24 = sphi %s1440_s24, %s1784_s24   ;;  %s1370_s23 = sphi %s1438_s23, %s1783_s23   ;;  %s1366_s22 = sphi %s1436_s22, %s1782_s22   ;;  %s1362_s21 = sphi %s1434_s21, %s1781_s21  }
   0x6   : > { %s1459_s27 = sadd.s32 1, %s1374_s24   ;;  %s30_s28 = sadd.s32 1, %s1370_s23 }
   0x7   : > { %s27_s29 = ssub.s32 %s1374_s24, %s1459_s27  ;;  %p37_p0 = scmp.ne.s32.totalorder %s1370_s23, %s1366_s22 }
   0x8   : > { %p28_p1 = scmp.eq.s32.totalorder %s27_s29, 0  ;;  %p38_p2 = scmp.eq.s32.totalorder %s1374_s24, 0 }
   0x9   : > { %p43_p3 = scmp.ne.s32.totalorder %s1366_s22, %s1362_s21  ;;  %p44_p4 = scmp.eq.s32.totalorder %s1455_s25, 0 }
   0xa   : > { %s1471_s30 = scalar_select %p28_p1, %s1370_s23, %s30_s28  }
   0xb   : > { %p1473_p5 = por %p38_p2, %p37_p0  ;;  %p1477_p6 = por %p44_p4, %p43_p3 }
   0xc   : > { %p130_p7 = scmp.eq.s32.totalorder %s1455_s25, 1  ;;  %p136_p8 = scmp.eq.s32.totalorder %s973_s26, 1 }
   0xd   : > { %p1091_p10 = scmp.lt.s32.totalorder %s1374_s24, 2  ;;  %s217_s11 = sand.u32 1, %s1370_s23  }
   0xe   : > { %p1484_p11 = por %p130_p7, %p37_p0  ;;  %p1488_p12 = por %p136_p8, %p43_p3 }
   0xf   : > { %s991_s12 = sshll.u32 %s1374_s24, 8  ;;  %s976_s13 = sshll.u32 %s217_s11, 4 }
  0x10   : > { %s1773_s9 = scalar_select %p1484_p11, 1, 0 }
  0x11   : > { %s1774_s10 = scalar_select %p1488_p12, 1, 0 }
  0x12   : > { %s1497_s16 = scalar_lea.hbm %s1763_s0, %s991_s12  ;;  %s221_s17 = scalar_lea.vmem [#allocation2], %s976_s13 }
  0x13   : > { %s229_s18 = sshll.u32 %s221_s17, 4  ;;  %p1501_p13 = pnand %p1091_p10, %p1473_p5  ;;  %s1505_s18 = int_to_ptr.vmem [resolvable:$true] %s229_s18 }
  0x14   : > { %s218_s20 = scalar_lea.sflag [#allocation3], %s217_s11  ;;  %s1278_s26 = scalar_lea.hbm %s1497_s16, 256 }
  0x15   : > { %p1279_p2 = scmp.ne.s32.totalorder %s1497_s16, %s1278_s26  ;;  %p1280_p3 = pneg %p1501_p13 }
  0x16   : > { %s1283_s7 = scalar_lea.hbm %s1763_s0, 512  ;;  %p1284_p5 = scmp.lt.u32.totalorder %s1497_s16, %s1763_s0 }
  0x17   : > { %p1281_p4 = pnand %p1280_p3, %p1279_p2  ;;  %p1285_p8 = scmp.lt.u32.totalorder %s1283_s7, %s1278_s26 }
  0x18   : > { %p1287_p9 = scmp.lt.u32.totalorder %s1278_s26, %s1497_s16 }
  0x19   : > { %p1282_p7 = pneg %p1281_p4  ;;  %p1286_p10 = por %p1285_p8, %p1284_p5 }
  0x1b   : > { %p1288_p0 = por %p1287_p9, %p1286_p10 }
  0x1d   : > { %p1289_p1 = pnand %p1288_p0, %p1282_p7 }
  0x1f   : > { %1292 = shalt.err (!%p1289_p1)
}
  0x20   : > { %s1293_s11 = scalar_lea.vmem %s1505_s18, 256  ;;  %s1376_s14 = smov [#allocation2]  }
  0x21   : > { %p1294_p2 = scmp.ne.s32.totalorder %s1505_s18, %s1293_s11  ;;  %s1298_s15 = sshll.u32 %s1376_s14, 4  ;;  %s1299_s15 = int_to_ptr.vmem [resolvable:$false] %s1298_s15 }
  0x22   : > { %s1300_s17 = scalar_lea.vmem %s1299_s15, 512  ;;  %p1301_p11 = scmp.lt.s32.totalorder %s1505_s18, %s1299_s15 }
  0x23   : > { %p1296_p4 = pnand %p1294_p2, %p1280_p3  ;;  %p1302_p5 = scmp.lt.s32.totalorder %s1300_s17, %s1293_s11 }
  0x25   : > { %p1297_p12 = pneg %p1296_p4  ;;  %p1303_p8 = por %p1302_p5, %p1301_p11 }
  0x27   : > { %p1304_p9 = pnand %p1303_p8, %p1297_p12 }
  0x29   : > { %1307 = shalt.err (!%p1304_p9)
}
  0x2a   : > { %1086 = dma.hbm_to_vmem [thread:$0]  (!%p1501_p13), %s1497_s16, 256, %s1505_s18, %s218_s20  }
  0x2b   : > { %p1776_p0 = scmp.lt.s32.totalorder %s1374_s24, 3  ;;  %p1777_p1 = scmp.ge.s32.totalorder %s1374_s24, 1 }
  0x2d   : > { %p235_p3 = pnand %p1777_p1, %p1776_p0 }
  0x2e   : > { %s1539_s26 = sand.u32 (!%p235_p3), 1, %s1366_s22  }
  0x2f   : > { %238 = sbr.rel (%p235_p3) target bundleno = 698 (0x2ba), region = 36  ;;  %s980_s28 = sshll.u32 (!%p235_p3), %s1539_s26, 4 }
  0x30   : > { %s241_s29 = scalar_lea.sflag (!%p235_p3), [#allocation3], %s1539_s26  ;;  %s244_s7 = scalar_lea.vmem (!%p235_p3), [#allocation2], %s980_s28 }
  0x36   : > { %1353 = dma.done.wait (%p1477_p6), %s241_s29, 256  }
  0x37   : > { %1355 = vsyncadd (%p1477_p6), %s241_s29, 4294967040  ;;  %v1547_v0 = vld [vmem:[%s244_s7] sm:$0xff]  ;;  %v1549_v1 = vld [vmem:[%s244_s7 + $0x8] sm:$0xf]  ;;  %v1377_v2 = vmov 0.0|0.0   ;;  %s1378_s16 = smov 126  }
  0x38   : > { %1059 = vmatprep.subr.bf16.mxu1 %v1377_v2  ;;  %310 = vrot.lane.b32.xlu0 %v1547_v0, %s1378_s16  ;;  %v297_v3 = vcombine.low %v1549_v1, %v1549_v1  ;;  %v1557_v4 = vcombine.high %v1547_v0, %v1547_v0  ;;  %v291_v5 = vld [vmem:[%s244_s7 + $0x8] sm:$0xff]  ;;  %s1379_s8 = smov 125   ;;  %s1380_s18 = smov 127   ;;  %v296_v7 = vcombine.low %v1547_v0, %v1547_v0  ;;  %vm304_vm0 = vcmask 1039360  }
  0x39   : > { %v520_v9 = vcombine.low %v291_v5, %v291_v5  ;;  %s1381_s19 = smov 108   ;;  %v504_v12 = vcombine.high %v291_v5, %v291_v5  ;;  %s1382_s20 = smov 107   ;;  %vm478_vm1 = vcmask 1043456   ;;  %vm316_vm2 = vcmask 1031168  }
  0x3a   : > { %v1156_v6 = vpack.i.bf16 %v297_v3, %v1547_v0  ;;  %v1151_v8 = vpack.i.bf16 %v1549_v1, %v1557_v4  ;;  %v1166_v11 = vpack.i.bf16 %v291_v5, %v1557_v4  ;;  %s1383_s12 = smov 106   ;;  %s1384_s13 = smov 109   ;;  %v1186_v14 = vpack.i.bf16 %v296_v7, %v291_v5 }
  0x3b   : > { %v1161_v10 = vpack.i.bf16 %v520_v9, %v1547_v0  ;;  %v1181_v13 = vpack.i.bf16 %v1547_v0, %v504_v12  ;;  %s1385_s11 = smov 105   ;;  %s1386_s14 = smov 124   ;;  %vm328_vm3 = vcmask 1022976   ;;  %vm513_vm4 = vcmask 891904  }
  0x3c   : > { %1157 = vrot.lane.b32.xlu1 %v1156_v6, %s1379_s8  ;;  %1147 = vrot.lane.b32.xlu0 %v1156_v6, %s1380_s18  ;;  %s1387_s15 = smov 104   ;;  %s1388_s17 = smov 88   ;;  %vm352_vm5 = vcmask 883712   ;;  %vm364_vm6 = vcmask 875520   ;;  %vm376_vm7 = vcmask 867328   ;;  %vm1396_vm8 = vmmov 0  }
  0x3d   : > { %s1389_s28 = smov 87   ;;  %s1390_s29 = smov 86   ;;  %vm388_vm9 = vcmask 859136   ;;  %vm340_vm10 = vcmask 1014784   ;;  %vm400_vm11 = vcmask 850944   ;;  %vm412_vm12 = vcmask 719872  }
  0x3e   : > { %s1391_s7 = smov 85   ;;  %vm424_vm13 = vcmask 711680   ;;  %vm436_vm14 = vcmask 703488   ;;  %vm448_vm15 = vcmask 695296   ;;  %p1778_p11 = scmp.ne.s32.totalorder %s1773_s9, 0 }
  0x40   : > { %298 = vrot.lane.b32.xlu1 %v296_v7, %s1380_s18  ;;  %1152 = vrot.lane.b32.xlu0 %v1151_v8, %s1378_s16  ;;  %s1392_s16 = smov 84   ;;  %s1394_s18 = smov 67  }
  0x44   : > { %322 = vrot.lane.b32.xlu1 %v296_v7, %s1379_s8  ;;  %1162 = vrot.lane.b32.xlu0 %v1161_v10, %s1381_s19  ;;  %s1393_s8 = smov 68  }
  0x48   : > { %1167 = vrot.lane.b32.xlu1 %v1166_v11, %s1382_s20  ;;  %1172 = vrot.lane.b32.xlu0 %v1161_v10, %s1383_s12 }
  0x4c   : > { %1177 = vrot.lane.b32.xlu1 %v1166_v11, %s1384_s13  ;;  %1182 = vrot.lane.b32.xlu0 %v1181_v13, %s1384_s13 }
  0x50   : > { %1187 = vrot.lane.b32.xlu1 %v1186_v14, %s1381_s19  ;;  %1192 = vrot.lane.b32.xlu0 %v1181_v13, %s1382_s20 }
  0x54   : > { %1197 = vrot.lane.b32.xlu1 %v1186_v14, %s1383_s12  ;;  %384 = vrot.lane.b32.xlu0 %v1557_v4, %s1385_s11 }
  0x58   : > { %545 = vrot.lane.b32.xlu1 %v291_v5, %s1385_s11  ;;  %547 = vrot.lane.b32.xlu0 %v504_v12, %s1385_s11 }
  0x5c   : > { %382 = vrot.lane.b32.xlu1 %v1547_v0, %s1385_s11  ;;  %1202 = vrot.lane.b32.xlu0 %v1151_v8, %s1386_s14 }
  0x60   : > { %350 = vrot.lane.b32.xlu1 %v297_v3, %s1381_s19  ;;  %362 = vrot.lane.b32.xlu0 %v1549_v1, %s1382_s20  ;;  %s1398_s20 = smov [#allocation5]  }
  0x64   : > { %374 = vrot.lane.b32.xlu1 %v297_v3, %s1383_s12  ;;  %334 = vrot.lane.b32.xlu0 %v1547_v0, %s1386_s14  ;;  %s1312_s12 = sshll.u32 %s1398_s20, 4  ;;  %s1313_s12 = int_to_ptr.vmem [resolvable:$false] %s1312_s12 }
  0x65   : > { %s1314_s13 = scalar_lea.vmem %s1313_s12, 384 }
  0x68   : > { %386 = vrot.lane.b32.xlu1 %v1549_v1, %s1385_s11  ;;  %1207 = vrot.lane.b32.xlu0 %v1156_v6, %s1387_s15  ;;  %s1077_s11 = smul.u32 12, %s1539_s26 }
  0x6c   : > { %1212 = vrot.lane.b32.xlu1 %v1151_v8, %s1388_s17  ;;  %1217 = vrot.lane.b32.xlu0 %v1156_v6, %s1389_s28 }
  0x70   : > { %394 = vrot.lane.b32.xlu1 %v296_v7, %s1387_s15  ;;  %406 = vrot.lane.b32.xlu0 %v1547_v0, %s1388_s17  ;;  %s268_s17 = scalar_lea.vmem [#allocation5], %s1077_s11 }
  0x74   : > { %418 = vrot.lane.b32.xlu1 %v296_v7, %s1389_s28  ;;  %1222 = vrot.lane.b32.xlu0 %v1151_v8, %s1390_s29  ;;  %s1078_s28 = smul.u32 192, %s1455_s25 }
  0x78   : > { %1227 = vrot.lane.b32.xlu1 %v1156_v6, %s1391_s7  ;;  %1232 = vrot.lane.b32.xlu0 %v1151_v8, %s1392_s16 }
  0x7c   : > { %1237 = vrot.lane.b32.xlu1 %v1156_v6, %s1393_s8  ;;  %430 = vrot.lane.b32.xlu0 %v1547_v0, %s1390_s29  ;;  %s849_s29 = sshll.u32 %s268_s17, 4  ;;  %s850_s29 = int_to_ptr.vmem [resolvable:$true] %s849_s29 }
  0x7d   : > { %s1308_s19 = scalar_lea.vmem %s850_s29, 192  ;;  %p1315_p7 = scmp.lt.s32.totalorder %s850_s29, %s1313_s12 }
  0x7e   : > { %p1309_p6 = scmp.ne.s32.totalorder %s850_s29, %s1308_s19  ;;  %p1316_p10 = scmp.lt.s32.totalorder %s1314_s13, %s1308_s19 }
  0x80   : > { %442 = vrot.lane.b32.xlu1 %v296_v7, %s1391_s7  ;;  %454 = vrot.lane.b32.xlu0 %v1547_v0, %s1392_s16  ;;  %p1310_p12 = pnand %p1309_p6, %p1778_p11  ;;  %p1317_p2 = por %p1316_p10, %p1315_p7 }
  0x82   : > { %p1311_p13 = pneg %p1310_p12 }
  0x84   : > { %466 = vrot.lane.b32.xlu1 %v296_v7, %s1393_s8  ;;  %s1717_s8 = scalar_lea.hbm %s1767_s4, %s1078_s28  ;;  %p1318_p4 = pnand %p1317_p2, %p1311_p13 }
  0xaa   : > { %v311_v15 = vpop.permute.xlu0 %310 }
  0xae   : > { %v1158_v16 = vpop.permute.xlu1 %1157  ;;  %v1148_v17 = vpop.permute.xlu0 %1147 }
  0xaf   : > { %v1150_v18 = vunpack.i.h.bf16 %v1148_v17  ;;  %v1149_v19 = vunpack.i.l.bf16 %v1148_v17  ;;  %v1160_v20 = vunpack.i.h.bf16 %v1158_v16  ;;  %v1159_v21 = vunpack.i.l.bf16 %v1158_v16 }
  0xb1   : > { %v306_v22 = vsel %vm304_vm0, %v1149_v19, %v1150_v18  ;;  %v481_v23 = vsel %vm478_vm1, %v1549_v1, %v1150_v18  ;;  %v330_v32 = vsel %vm328_vm3, %v1159_v21, %v1160_v20 }
  0xb2   : > { %v299_v24 = vpop.permute.xlu1 %298  ;;  %v1153_v25 = vpop.permute.xlu0 %1152  ;;  %v480_v26 = vsel %vm478_vm1, %v1557_v4, %v306_v22 }
  0xb3   : > { %v1155_v27 = vunpack.i.h.bf16 %v1153_v25  ;;  %v1154_v28 = vunpack.i.l.bf16 %v1153_v25  ;;  %v1241_v29 = vpack.i.bf16 %v481_v23, %v480_v26  ;;  %v305_v30 = vsel %vm304_vm0, %v299_v24, %v1149_v19 }
  0xb4   : > { %v479_v41 = vsel %vm478_vm1, %v1547_v0, %v305_v30  ;;  %v1395_v19 = vmov 0.0   ;;  %vm460_vm0 = vcmask 687104  }
  0xb5   : > { %v318_v31 = vsel %vm316_vm2, %v1154_v28, %v1155_v27  ;;  %1242 = vrot.lane.b32.xlu0 %v1241_v29, %s1394_s18  ;;  %v484_v33 = vsel %vm478_vm1, %v1155_v27, %v1160_v20  ;;  %v317_v38 = vsel %vm316_vm2, %v311_v15, %v1154_v28  ;;  %702 = vmatprep.mubr.f32.mxu0 %v1395_v19  ;;  %vm472_vm2 = vcmask 556032  }
  0xb6   : > { %v323_v34 = vpop.permute.xlu1 %322  ;;  %v1163_v35 = vpop.permute.xlu0 %1162  ;;  %v483_v36 = vsel %vm478_vm1, %v318_v31, %v330_v32  ;;  %v1060_v37 = vpack.c.bf16 %v484_v33, %v481_v23  ;;  %1032 = vmatprep.mubr.msk.f32.mxu1 %vm1396_vm8, %v1395_v19 }
  0xb7   : > { %v329_v39 = vsel %vm328_vm3, %v323_v34, %v1159_v21  ;;  %v1246_v40 = vpack.i.bf16 %v484_v33, %v483_v36  ;;  %v1035_v43 = vpack.c.bf16 %v483_v36, %v480_v26  ;;  %v1165_v52 = vunpack.i.h.bf16 %v1163_v35 }
  0xb8   : > { %v482_v42 = vsel %vm478_vm1, %v317_v38, %v329_v39  ;;  %1061 = vmatpush3.bf16.msra.mxu1 %v1060_v37  ;;  %v1594_v53 = vunpack.i.l.bf16 %v1163_v35  ;;  %v1397_v35 = vmov 0   ;;  %vm598_vm3 = vcmask 547840  }
  0xb9   : > { %1247 = vrot.lane.b32.xlu1 %v1246_v40, %s1394_s18  ;;  %v1251_v44 = vpack.i.bf16 %v482_v42, %v479_v41  ;;  %v1037_v45 = vpack.c.bf16 %v482_v42, %v479_v41  ;;  %1062 = vmatprep.subr.bf16.mxu1 %v1377_v2  ;;  %v622_v40 = vld [vmem:[%s1765_s2] sm:$0xf] }
  0xba   : > { %1036 = vmatprep.subr.bf16.mxu0 %v1035_v43  ;;  %v1168_v46 = vpop.permute.xlu1 %1167  ;;  %v1173_v47 = vpop.permute.xlu0 %1172  ;;  %v525_v0 = vsel %vm352_vm5, %v1594_v53, %v1165_v52  ;;  %1271 = vset.pattern.permute.xlu1 %v1397_v35 }
  0xbb   : > { %1252 = vrot.lane.b32.xlu0 %v1251_v44, %s1394_s18  ;;  %1038 = vmatpush1.bf16.msra.mxu0 %v1037_v45  ;;  %v1170_v54 = vunpack.i.h.bf16 %v1168_v46  ;;  %v1596_v55 = vunpack.i.l.bf16 %v1168_v46  ;;  %v1175_v57 = vunpack.i.h.bf16 %v1173_v47  ;;  %v1598_v58 = vunpack.i.l.bf16 %v1173_v47 }
  0xbc   : > { %1272 = vset.pattern.permute.xlu0 %v1397_v35 }
  0xbd   : > { %v533_v4 = vsel %vm364_vm6, %v1596_v55, %v1170_v54  ;;  %v541_v8 = vsel %vm376_vm7, %v1598_v58, %v1175_v57 }
  0xbe   : > { %v1178_v48 = vpop.permute.xlu1 %1177  ;;  %v1183_v49 = vpop.permute.xlu0 %1182  ;;  %v554_v27 = vsel %vm478_vm1, %v533_v4, %v541_v8 }
  0xbf   : > { %v1180_v50 = vunpack.i.h.bf16 %v1178_v48  ;;  %v1179_v51 = vunpack.i.l.bf16 %v1178_v48  ;;  %v1184_v56 = vunpack.i.l.bf16 %v1183_v49  ;;  %v1185_v1 = vunpack.i.h.bf16 %v1183_v49 }
  0xc1   : > { %v515_v61 = vsel %vm513_vm4, %v1179_v51, %v1180_v50  ;;  %v516_v5 = vsel %vm513_vm4, %v1180_v50, %v1184_v56  ;;  %v514_v17 = vsel %vm513_vm4, %v1185_v1, %v1179_v51  ;;  %vm628_vm4 = vcmask 818176  }
  0xc2   : > { %v1188_v59 = vpop.permute.xlu1 %1187  ;;  %v1193_v60 = vpop.permute.xlu0 %1192  ;;  %v552_v12 = vsel %vm478_vm1, %v515_v61, %v525_v0 }
  0xc3   : > { %v1190_v62 = vunpack.i.h.bf16 %v1188_v59  ;;  %v1189_v63 = vunpack.i.l.bf16 %v1188_v59  ;;  %v1195_v3 = vunpack.i.h.bf16 %v1193_v60  ;;  %v1194_v7 = vunpack.i.l.bf16 %v1193_v60 }
  0xc5   : > { %v526_v6 = vsel %vm352_vm5, %v1165_v52, %v1189_v63  ;;  %v353_v9 = vsel %vm352_vm5, %v1190_v62, %v1594_v53  ;;  %v365_v18 = vsel %vm364_vm6, %v1195_v3, %v1596_v55  ;;  %v534_v20 = vsel %vm364_vm6, %v1170_v54, %v1194_v7 }
  0xc6   : > { %v1198_v10 = vpop.permute.xlu1 %1197  ;;  %v1611_v11 = vpop.permute.xlu0 %384  ;;  %v553_v13 = vsel %vm478_vm1, %v516_v5, %v526_v6  ;;  %v551_v26 = vsel %vm478_vm1, %v514_v17, %v353_v9 }
  0xc7   : > { %v1200_v14 = vunpack.i.h.bf16 %v1198_v10  ;;  %v1199_v15 = vunpack.i.l.bf16 %v1198_v10  ;;  %v1256_v16 = vpack.i.bf16 %v553_v13, %v552_v12 }
  0xc9   : > { %v377_v21 = vsel %vm376_vm7, %v1200_v14, %v1598_v58  ;;  %v542_v22 = vsel %vm376_vm7, %v1175_v57, %v1199_v15  ;;  %1257 = vrot.lane.b32.xlu1 %v1256_v16, %s1394_s18 }
  0xca   : > { %v546_v23 = vpop.permute.xlu1 %545  ;;  %v548_v24 = vpop.permute.xlu0 %547  ;;  %v488_v25 = vsel %vm478_vm1, %v365_v18, %v377_v21  ;;  %v555_v28 = vsel %vm478_vm1, %v534_v20, %v542_v22 }
  0xcb   : > { %v1266_v29 = vpack.i.bf16 %v488_v25, %v551_v26  ;;  %v1261_v30 = vpack.i.bf16 %v555_v28, %v554_v27  ;;  %v550_v33 = vsel %vm388_vm9, %v546_v23, %v548_v24  ;;  %v549_v34 = vsel %vm388_vm9, %v1611_v11, %v546_v23 }
  0xcd   : > { %1267 = vrot.lane.b32.xlu1 %v1266_v29, %s1394_s18  ;;  %1262 = vrot.lane.b32.xlu0 %v1261_v30, %s1394_s18 }
  0xce   : > { %v383_v31 = vpop.permute.xlu1 %382  ;;  %v1203_v32 = vpop.permute.xlu0 %1202 }
  0xcf   : > { %v1205_v36 = vunpack.i.h.bf16 %v1203_v32  ;;  %v1204_v37 = vunpack.i.l.bf16 %v1203_v32  ;;  %v389_v41 = vsel %vm388_vm9, %v383_v31, %v1611_v11 }
  0xd1   : > { %596 = vrot.lane.b32.xlu1 %v550_v33, %s1394_s18  ;;  %594 = vrot.lane.b32.xlu0 %v549_v34, %s1394_s18  ;;  %v342_v42 = vsel %vm340_vm10, %v1204_v37, %v1205_v36 }
  0xd2   : > { %v351_v38 = vpop.permute.xlu1 %350  ;;  %v363_v39 = vpop.permute.xlu0 %362 }
  0xd3   : > { %v354_v43 = vsel %vm352_vm5, %v1594_v53, %v351_v38  ;;  %v487_v44 = vsel %vm478_vm1, %v1205_v36, %v351_v38  ;;  %v366_v47 = vsel %vm364_vm6, %v1596_v55, %v363_v39  ;;  %vm784_vm5 = vcmask 519168  }
  0xd4   : > { %v486_v51 = vsel %vm478_vm1, %v342_v42, %v354_v43 }
  0xd5   : > { %592 = vrot.lane.b32.xlu0 %v389_v41, %s1394_s18  ;;  %625 = vperm.xlu1 %1271, %v622_v40   ;;  %s827_s18 = scalar_lea.sflag [#allocation4], %s1539_s26 }
  0xd6   : > { %v375_v45 = vpop.permute.xlu1 %374  ;;  %v335_v46 = vpop.permute.xlu0 %334 }
  0xd7   : > { %v378_v48 = vsel %vm376_vm7, %v1598_v58, %v375_v45  ;;  %v490_v49 = vsel %vm478_vm1, %v363_v39, %v375_v45  ;;  %v341_v50 = vsel %vm340_vm10, %v335_v46, %v1204_v37 }
  0xd8   : > { %v489_v52 = vsel %vm478_vm1, %v366_v47, %v378_v48  ;;  %v1063_v53 = vpack.c.bf16 %v490_v49, %v487_v44  ;;  %v485_v54 = vsel %vm478_vm1, %v341_v50, %v353_v9 }
  0xd9   : > { %v1039_v56 = vpack.c.bf16 %v489_v52, %v486_v51  ;;  %v1041_v57 = vpack.c.bf16 %v488_v25, %v485_v54 }
  0xda   : > { %v387_v59 = vpop.permute.xlu1 %386  ;;  %v1208_v60 = vpop.permute.xlu0 %1207  ;;  %1064 = vmatpush3.bf16.msra.mxu1 %v1063_v53 }
  0xdb   : > { %v1210_v61 = vunpack.i.h.bf16 %v1208_v60  ;;  %v1209_v55 = vunpack.i.l.bf16 %v1208_v60  ;;  %1040 = vmatprep.subr.bf16.mxu0 %v1039_v56  ;;  %1065 = vmatprep.subr.bf16.mxu1 %v1377_v2  ;;  %v390_v6 = vsel %vm388_vm9, %v1611_v11, %v387_v59 }
  0xdc   : > { %1042 = vmatpush1.bf16.msra.mxu0 %v1041_v57 }
  0xdd   : > { %v402_v63 = vsel %vm400_vm11, %v1209_v55, %v1210_v61  ;;  %v493_v0 = vsel %vm478_vm1, %v387_v59, %v1210_v61 }
  0xde   : > { %v1213_v58 = vpop.permute.xlu1 %1212  ;;  %v1218_v62 = vpop.permute.xlu0 %1217  ;;  %v492_v12 = vsel %vm478_vm1, %v390_v6, %v402_v63 }
  0xdf   : > { %v1215_v1 = vunpack.i.h.bf16 %v1213_v58  ;;  %v1214_v3 = vunpack.i.l.bf16 %v1213_v58  ;;  %v1220_v4 = vunpack.i.h.bf16 %v1218_v62  ;;  %v1219_v5 = vunpack.i.l.bf16 %v1218_v62 }
  0xe1   : > { %v414_v7 = vsel %vm412_vm12, %v1214_v3, %v1215_v1  ;;  %v426_v8 = vsel %vm424_vm13, %v1219_v5, %v1220_v4  ;;  %v496_v9 = vsel %vm478_vm1, %v1215_v1, %v1220_v4 }
  0xe2   : > { %v395_v10 = vpop.permute.xlu1 %394  ;;  %v495_v13 = vsel %vm478_vm1, %v414_v7, %v426_v8  ;;  %v407_v14 = vpop.permute.xlu0 %406  ;;  %v1066_v15 = vpack.c.bf16 %v496_v9, %v493_v0 }
  0xe3   : > { %v1043_v16 = vpack.c.bf16 %v495_v13, %v492_v12  ;;  %v401_v17 = vsel %vm400_vm11, %v395_v10, %v1209_v55  ;;  %v413_v11 = vsel %vm412_vm12, %v407_v14, %v1214_v3 }
  0xe4   : > { %1067 = vmatpush3.bf16.msra.mxu1 %v1066_v15  ;;  %v491_v22 = vsel %vm478_vm1, %v389_v41, %v401_v17 }
  0xe5   : > { %1044 = vmatprep.subr.bf16.mxu0 %v1043_v16  ;;  %1068 = vmatprep.subr.bf16.mxu1 %v1377_v2 }
  0xe6   : > { %v419_v18 = vpop.permute.xlu1 %418  ;;  %v1223_v20 = vpop.permute.xlu0 %1222 }
  0xe7   : > { %v425_v21 = vsel %vm424_vm13, %v419_v18, %v1219_v5  ;;  %v1225_v25 = vunpack.i.h.bf16 %v1223_v20  ;;  %v1224_v26 = vunpack.i.l.bf16 %v1223_v20 }
  0xe8   : > { %v494_v23 = vsel %vm478_vm1, %v413_v11, %v425_v21 }
  0xe9   : > { %v1045_v24 = vpack.c.bf16 %v494_v23, %v491_v22  ;;  %v438_v33 = vsel %vm436_vm14, %v1224_v26, %v1225_v25 }
  0xea   : > { %v1228_v27 = vpop.permute.xlu1 %1227  ;;  %v1233_v28 = vpop.permute.xlu0 %1232 }
  0xeb   : > { %1046 = vmatpush1.bf16.msra.mxu0 %v1045_v24  ;;  %v1230_v29 = vunpack.i.h.bf16 %v1228_v27  ;;  %v1229_v30 = vunpack.i.l.bf16 %v1228_v27  ;;  %v1235_v31 = vunpack.i.h.bf16 %v1233_v28  ;;  %v1234_v32 = vunpack.i.l.bf16 %v1233_v28 }
  0xed   : > { %v450_v34 = vsel %vm448_vm15, %v1229_v30, %v1230_v29  ;;  %v462_v39 = vsel %vm460_vm0, %v1234_v32, %v1235_v31  ;;  %v499_v40 = vsel %vm478_vm1, %v1225_v25, %v1230_v29  ;;  %v621_v29 = vld [vmem:[%s1764_s1] sm:$0xf] }
  0xee   : > { %v1238_v35 = vpop.permute.xlu1 %1237  ;;  %v431_v36 = vpop.permute.xlu0 %430  ;;  %v498_v41 = vsel %vm478_vm1, %v438_v33, %v450_v34  ;;  %v786_v34 = vld [vmem:[%s1766_s3] sm:$0x7] }
  0xef   : > { %v1240_v37 = vunpack.i.h.bf16 %v1238_v35  ;;  %v1239_v38 = vunpack.i.l.bf16 %v1238_v35  ;;  %v437_v47 = vsel %vm436_vm14, %v431_v36, %v1224_v26 }
  0xf1   : > { %v474_v42 = vsel %vm472_vm2, %v1239_v38, %v1240_v37  ;;  %v502_v43 = vsel %vm478_vm1, %v1235_v31, %v1240_v37 }
  0xf2   : > { %v443_v44 = vpop.permute.xlu1 %442  ;;  %v1069_v45 = vpack.c.bf16 %v502_v43, %v499_v40  ;;  %v501_v46 = vsel %vm478_vm1, %v462_v39, %v474_v42  ;;  %v455_v50 = vpop.permute.xlu0 %454 }
  0xf3   : > { %v449_v48 = vsel %vm448_vm15, %v443_v44, %v1229_v30  ;;  %v1047_v49 = vpack.c.bf16 %v501_v46, %v498_v41  ;;  %v461_v51 = vsel %vm460_vm0, %v455_v50, %v1234_v32 }
  0xf4   : > { %1070 = vmatpush3.bf16.msra.mxu1 %v1069_v45  ;;  %v497_v52 = vsel %vm478_vm1, %v437_v47, %v449_v48 }
  0xf5   : > { %1048 = vmatprep.subr.bf16.mxu0 %v1047_v49  ;;  %1071 = vmatprep.subr.bf16.mxu1 %v1377_v2 }
  0xf6   : > { %v467_v53 = vpop.permute.xlu1 %466 }
  0xf7   : > { %v473_v54 = vsel %vm472_vm2, %v467_v53, %v1239_v38 }
  0xf8   : > { %v500_v56 = vsel %vm478_vm1, %v461_v51, %v473_v54 }
  0xf9   : > { %v1049_v57 = vpack.c.bf16 %v500_v56, %v497_v52 }
  0xfb   : > { %1050 = vmatpush1.bf16.msra.mxu0 %v1049_v57 }
 0x127   : > { %v1243_v59 = vpop.permute.xlu0 %1242 }
 0x128   : > { %v1245_v60 = vunpack.i.h.bf16 %v1243_v59  ;;  %v1244_v61 = vunpack.i.l.bf16 %v1243_v59 }
 0x12a   : > { %v600_v63 = vsel %vm598_vm3, %v1244_v61, %v1245_v60 }
 0x12b   : > { %v1248_v55 = vpop.permute.xlu1 %1247 }
 0x12c   : > { %v1250_v58 = vunpack.i.h.bf16 %v1248_v55  ;;  %v1249_v62 = vunpack.i.l.bf16 %v1248_v55 }
 0x12d   : > { %v1253_v0 = vpop.permute.xlu0 %1252 }
 0x12e   : > { %v1072_v1 = vpack.c.bf16 %v1250_v58, %v1245_v60  ;;  %v1255_v3 = vunpack.i.h.bf16 %v1253_v0  ;;  %v1254_v4 = vunpack.i.l.bf16 %v1253_v0  ;;  %v602_v5 = vsel %vm598_vm3, %v1249_v62, %v1250_v58 }
 0x12f   : > { %v1051_v6 = vpack.c.bf16 %v602_v5, %v600_v63 }
 0x130   : > { %1073 = vmatpush3.bf16.msra.mxu1 %v1072_v1  ;;  %v599_v7 = vsel %vm598_vm3, %v1254_v4, %v1244_v61  ;;  %v601_v8 = vsel %vm598_vm3, %v1255_v3, %v1249_v62 }
 0x131   : > { %1052 = vmatprep.subr.bf16.mxu0 %v1051_v6  ;;  %v1053_v9 = vpack.c.bf16 %v601_v8, %v599_v7  ;;  %1074 = vmatprep.subr.bf16.mxu1 %v1377_v2 }
 0x133   : > { %1054 = vmatpush1.bf16.msra.mxu0 %v1053_v9 }
 0x13b   : > { %v1258_v10 = vpop.permute.xlu1 %1257 }
 0x13c   : > { %v1260_v12 = vunpack.i.h.bf16 %v1258_v10  ;;  %v1259_v13 = vunpack.i.l.bf16 %v1258_v10 }
 0x13e   : > { %v604_v20 = vsel %vm598_vm3, %v1259_v13, %v1260_v12 }
 0x13f   : > { %v1268_v14 = vpop.permute.xlu1 %1267  ;;  %v1263_v15 = vpop.permute.xlu0 %1262 }
 0x140   : > { %v1270_v16 = vunpack.i.h.bf16 %v1268_v14  ;;  %v1269_v17 = vunpack.i.l.bf16 %v1268_v14  ;;  %v1265_v11 = vunpack.i.h.bf16 %v1263_v15  ;;  %v1264_v18 = vunpack.i.l.bf16 %v1263_v15 }
 0x142   : > { %v1075_v21 = vpack.c.bf16 %v1265_v11, %v1260_v12  ;;  %v606_v22 = vsel %vm598_vm3, %v1264_v18, %v1265_v11  ;;  %v603_v23 = vsel %vm598_vm3, %v1269_v17, %v1259_v13  ;;  %v605_v24 = vsel %vm598_vm3, %v1270_v16, %v1264_v18 }
 0x143   : > { %v597_v2 = vpop.permute.xlu1 %596  ;;  %v595_v25 = vpop.permute.xlu0 %594  ;;  %v1055_v26 = vpack.c.bf16 %v606_v22, %v604_v20  ;;  %v1057_v27 = vpack.c.bf16 %v605_v24, %v603_v23 }
 0x144   : > { %1076 = vmatpush3.bf16.msra.mxu1 %v1075_v21  ;;  %v608_v28 = vsel %vm598_vm3, %v595_v25, %v597_v2 }
 0x145   : > { %1056 = vmatprep.subr.bf16.mxu0 %v1055_v26  ;;  %1030 = vmatprep.subr.mxu1 %v1395_v19  ;;  %v788_v19 = vlaneseq }
 0x146   : > { %1058 = vmatpush1.bf16.msra.mxu0 %v1057_v27 }
 0x147   : > { %v593_v30 = vpop.permute.xlu0 %592  ;;  %983 = vmatprep.subr.msk.mxu0 %vm478_vm1, %v608_v28  ;;  %v789_v32 = vshrl.u32 %v788_v19, 7 }
 0x148   : > { %v607_v31 = vsel %vm598_vm3, %v593_v30, %v595_v25  ;;  %1031 = vmatpush3.msk.msra.mxu1 %vm478_vm1, %v597_v2 }
 0x149   : > { %1033 = vmatmul.mubr.msk.f32.vlgmr.msra.gmra.mrb[0].mxu1 %vm628_vm4, %v621_v29  ;;  %v798_v33 = vsub.s32 2, %v789_v32  ;;  %v790_v35 = vsub.s32 0, %v789_v32  ;;  %v794_v37 = vsub.s32 1, %v789_v32 }
 0x14a   : > { %984 = vmatpush1.msk.msra.mxu0 %vm478_vm1, %v607_v31 }
 0x14b   : > { %985 = vmatmul.mubr.msk.f32.vlgmr.msra.gmra.mrb[0].mxu0 %vm628_vm4, %v621_v29  ;;  %v799_v39 = vrot.slane %v786_v34, %v798_v33  ;;  %v791_v41 = vrot.slane %v786_v34, %v790_v35  ;;  %v795_v44 = vrot.slane %v786_v34, %v794_v37 }
 0x154   : > { %v626_v36 = vpop.permute.xlu1 %625 }
 0x21c   : > { %v775_v38 = vpop.f32.mrb[0].mxu1 }
 0x21d   : > { %v776_v40 = vadd.f32 %v775_v38, %v626_v36  ;;  %v1034_v42 = vpop.f32.mrb[1].mxu1 }
 0x21e   : > { %v704_v43 = vpop.f32.mrb[0].mxu0 }
 0x21f   : > { %v705_v45 = vadd.f32 %v704_v43, %v626_v36  ;;  %v706_v46 = vpop.f32.mrb[1].mxu0  ;;  %785 = vst.msk [vmem:[%s268_s17 + $0x8] sm:$0xf] %vm784_vm5, %v776_v40  ;;  %v805_v48 = vmul.f32 %v799_v39, %v776_v40 }
 0x220   : > { %v707_v47 = vadd.f32 %v706_v46, %v626_v36 }
 0x221   : > { %v803_v49 = vmul.f32 %v791_v41, %v705_v45  ;;  %v817_v57 = vmul.f32 %v805_v48, %v776_v40  ;;  %v809_v61 = vsel %vm784_vm5, %v805_v48, 0.0 }
 0x222   : > { %v781_v50 = vcombine.low %v705_v45, %v707_v47  ;;  %v804_v51 = vmul.f32 %v795_v44, %v707_v47 }
 0x223   : > { %v815_v52 = vmul.f32 %v803_v49, %v705_v45  ;;  %v806_v53 = vsel %vm478_vm1, %v803_v49, 0.0  ;;  %v821_v63 = vsel %vm784_vm5, %v817_v57, 0.0 }
 0x224   : > { %v816_v54 = vmul.f32 %v804_v51, %v707_v47  ;;  %v807_v56 = vsel %vm478_vm1, %v804_v51, 0.0  ;;  %783 = vst [vmem:[%s268_s17] sm:$0xff] %v781_v50 }
 0x225   : > { %v808_v59 = vadd.f32 %v807_v56, %v806_v53  ;;  %v818_v60 = vsel %vm478_vm1, %v815_v52, 0.0 }
 0x226   : > { %v819_v55 = vsel %vm478_vm1, %v816_v54, 0.0 }
 0x227   : > { %v810_v58 = vadd.f32 %v809_v61, %v808_v59  ;;  %v820_v62 = vadd.f32 %v819_v55, %v818_v60 }
 0x229   : > { %811 = vadd.xlane.f32.xlu0 %v810_v58  ;;  %v822_v0 = vadd.f32 %v821_v63, %v820_v62 }
 0x22b   : > { %823 = vadd.xlane.f32.xlu1 %v822_v0 }
 0x22c   : > { %1321 = shalt.err (!%p1318_p4)
}
 0x22d   : > { %s1322_s26 = scalar_lea.hbm %s1717_s8, 192  ;;  %s1326_s15 = scalar_lea.hbm %s1767_s4, 384 }
 0x22e   : > { %p1323_p5 = scmp.ne.s32.totalorder %s1717_s8, %s1322_s26  ;;  %p1327_p0 = scmp.lt.u32.totalorder %s1717_s8, %s1767_s4 }
 0x22f   : > { %p1328_p1 = scmp.lt.u32.totalorder %s1326_s15, %s1322_s26  ;;  %p1330_p6 = scmp.lt.u32.totalorder %s1322_s26, %s1717_s8 }
 0x230   : > { %p1324_p8 = pnand %p1323_p5, %p1778_p11 }
 0x231   : > { %p1329_p3 = por %p1328_p1, %p1327_p0 }
 0x232   : > { %p1325_p9 = pneg %p1324_p8 }
 0x233   : > { %p1331_p12 = por %p1330_p6, %p1329_p3 }
 0x235   : > { %p1332_p13 = pnand %p1331_p12, %p1325_p9 }
 0x237   : > { %1335 = shalt.err (!%p1332_p13)
}
 0x238   : > { %1081 = dma.vmem_to_hbm [thread:$0]  (%p1778_p11), %s850_s29, 192, %s1717_s8, %s827_s18   ;;  %vm813_vm1 = vcmask 3072  }
 0x239   : > { %p281_p7 = scmp.lt.s32.totalorder %s1455_s25, 1 }
 0x23b   : > { %s1786_s25 = smov (!%p281_p7, %s1455_s25), 1 }
 0x23c   : > { %s981_s7 = sshll.u32 %s1786_s25, 2 }
 0x23d   : > { %s284_s20 = scalar_lea.vmem %s1768_s5, %s981_s7  ;;  %s288_s26 = scalar_lea.vmem %s1769_s6, %s981_s7 }
 0x2b6   : > { %v812_v1 = vpop.xlane.xlu0 %811 }
 0x2b7   : > { %814 = vst.msk [vmem:[%s284_s20] sm:$0xf] %vm813_vm1, %v812_v1 }
 0x2b8   : > { %v824_v3 = vpop.xlane.xlu1 %823 }
 0x2b9   : > { %825 = vst.msk [vmem:[%s288_s26] sm:$0xf] %vm813_vm1, %v824_v3 }
 0x2ba PF: > { %s867_s9 = sand.u32 1, %s1362_s21   ;;  %p1779_p11 = scmp.ne.s32.totalorder %s1774_s10, 0 }
 0x2bb   : > { %p1780_p10 = scmp.ge.s32.totalorder %s1374_s24, 2  ;;  %s868_s25 = scalar_lea.sflag [#allocation4], %s867_s9 }
 0x2bd   : > { %p1088_p2 = pnand %p1780_p10, %p1779_p11 }
 0x2bf   : > { %1357 = dma.done.wait (!%p1088_p2), %s868_s25, 192  }
 0x2c0   : > { %1359 = vsyncadd (!%p1088_p2), %s868_s25, 4294967104  ;;  %p20_p4 = scmp.ge.s32.totalorder %s1459_s27, 4   ;;  %s1781_s21 = smov %s1366_s22 }
 0x2c1   : > { %s1782_s22 = smov %s1370_s23  ;;  %s1783_s23 = smov %s1471_s30 }
 0x2c2   : > { %s1784_s24 = smov %s1459_s27  ;;  %22 = sbr.rel (!%p20_p4) target bundleno = 5 (0x5), region = 105 }
 0x2c9   :  { %887 = vsyncpa [#allocation3], 1 }
 0x2ca   :  { %889 = vsyncpa [#allocation3 + $0x1], 1 }
 0x2cb   :  { %890 = vsyncpa [#allocation4], 1 }
 0x2cc   :  { %892 = vsyncpa [#allocation4 + $0x1], 1 }

</bundles_post_ra>
